<compile_context>
chip_gen: v6e
topology: v6e:2x2x1
jax: 0.10.0
libtpu: 0.0.40
codegen_flags: <defaults>
</compile_context>

<pallas_src>
import jax
import jax.numpy as jnp
from jax.experimental import pallas as pl
from jax.experimental.pallas import tpu as pltpu


# ----------------------------- elementwise helpers (f32) -----------------------------

def _elu(x):
    # ELU(alpha=1): x for x > 0, exp(x) - 1 otherwise (guard exp against overflow).
    return jnp.where(x > 0, x, jnp.exp(jnp.minimum(x, 0.0)) - 1.0)


def _softplus(x):
    # PyTorch softplus: log(1 + exp(x)) with linear region above threshold=20.
    return jnp.where(x > 20.0, x, jnp.log1p(jnp.exp(jnp.minimum(x, 20.0))))


def _sigmoid(x):
    # 1 / (1 + exp(-x)); reciprocal goes to the EUP slot (approx), result is clamped later.
    return pl.reciprocal(1.0 + jnp.exp(-x), approx=True)


# ----------------------------------- kernel ------------------------------------------

def vae_kernel(x_ref, eps_ref,
               ew1_ref, eb1_ref, ew2_ref, eb2_ref,
               ew3m_ref, eb3m_ref, ew3s_ref, eb3s_ref,
               dw1_ref, db1_ref, dw2_ref, db2_ref, dw3_ref, db3_ref,
               xhat_ref, mu_ref, sigma_ref):
    # All feature dims are pre-padded to multiples of 128 (lane-dense); weights are bf16,
    # biases f32; matmuls accumulate in f32 on the MXU.
    x = x_ref[...].astype(jnp.bfloat16)                                   # (TB, IN_P)

    # ---------------- Encoder ----------------
    h = jnp.dot(x, ew1_ref[...], preferred_element_type=jnp.float32) + eb1_ref[...]
    h = _elu(h)                                                           # dropout -> identity (eval)
    h = jnp.dot(h.astype(jnp.bfloat16), ew2_ref[...],
                preferred_element_type=jnp.float32) + eb2_ref[...]
    h = jnp.tanh(h)                                                       # dropout -> identity (eval)

    hb = h.astype(jnp.bfloat16)
    mu = jnp.dot(hb, ew3m_ref[...], preferred_element_type=jnp.float32) + eb3m_ref[...]
    s_pre = jnp.dot(hb, ew3s_ref[...], preferred_element_type=jnp.float32) + eb3s_ref[...]
    sigma = 1e-6 + _softplus(s_pre)

    # ---------------- Reparameterize ----------------
    z = mu + sigma * eps_ref[...]                                         # (TB, L_P)

    # ---------------- Decoder ----------------
    d = jnp.dot(z.astype(jnp.bfloat16), dw1_ref[...],
                preferred_element_type=jnp.float32) + db1_ref[...]
    d = jnp.tanh(d)                                                       # dropout -> identity (eval)
    d = jnp.dot(d.astype(jnp.bfloat16), dw2_ref[...],
                preferred_element_type=jnp.float32) + db2_ref[...]
    d = _elu(d)                                                           # dropout -> identity (eval)
    xh = jnp.dot(d.astype(jnp.bfloat16), dw3_ref[...],
                 preferred_element_type=jnp.float32) + db3_ref[...]
    xh = _sigmoid(xh)

    xhat_ref[...] = jnp.clip(xh, 1e-8, 1.0 - 1e-8)
    mu_ref[...] = mu
    sigma_ref[...] = sigma


# ----------------------------------- wrapper ------------------------------------------

def _round_up(n, m):
    return ((n + m - 1) // m) * m


def _pad2(a, rows, cols):
    r, c = a.shape
    return jnp.pad(a, ((0, rows - r), (0, cols - c)))


def init_params(key, in_dim, hidden_dim, latent_dim):
    """Torch-like init (U[-1/sqrt(fan_in), 1/sqrt(fan_in)]), weights (in, out), biases (1, out)."""
    def linear(k, fan_in, fan_out):
        kw, kb = jax.random.split(k)
        bound = 1.0 / jnp.sqrt(fan_in)
        w = jax.random.uniform(kw, (fan_in, fan_out), jnp.float32, -bound, bound)
        b = jax.random.uniform(kb, (1, fan_out), jnp.float32, -bound, bound)
        return w, b

    ks = jax.random.split(key, 6)
    ew1, eb1 = linear(ks[0], in_dim, hidden_dim)
    ew2, eb2 = linear(ks[1], hidden_dim, hidden_dim)
    ew3, eb3 = linear(ks[2], hidden_dim, 2 * latent_dim)
    dw1, db1 = linear(ks[3], latent_dim, hidden_dim)
    dw2, db2 = linear(ks[4], hidden_dim, hidden_dim)
    dw3, db3 = linear(ks[5], hidden_dim, in_dim)
    return (ew1, eb1, ew2, eb2, ew3, eb3, dw1, db1, dw2, db2, dw3, db3)


def prepare_params(params, in_dim, hidden_dim, latent_dim):
    """Split the mu/sigma head, zero-pad feature dims to multiples of 128, cast weights to bf16.

    Zero-padded weight columns + zero bias padding keep padded activation lanes at exactly 0
    through elu/tanh, so they never contaminate real lanes; padded mu/sigma/x_hat lanes are
    sliced off in the wrapper before being returned.
    """
    (ew1, eb1, ew2, eb2, ew3, eb3, dw1, db1, dw2, db2, dw3, db3) = params
    IN_P = _round_up(in_dim, 128)
    H_P = _round_up(hidden_dim, 128)
    L_P = _round_up(latent_dim, 128)

    ew3m, ew3s = ew3[:, :latent_dim], ew3[:, latent_dim:]
    eb3m, eb3s = eb3[:, :latent_dim], eb3[:, latent_dim:]

    bf = jnp.bfloat16
    prepared = (
        _pad2(ew1, IN_P, H_P).astype(bf),  _pad2(eb1, 1, H_P),
        _pad2(ew2, H_P, H_P).astype(bf),   _pad2(eb2, 1, H_P),
        _pad2(ew3m, H_P, L_P).astype(bf),  _pad2(eb3m, 1, L_P),
        _pad2(ew3s, H_P, L_P).astype(bf),  _pad2(eb3s, 1, L_P),
        _pad2(dw1, L_P, H_P).astype(bf),   _pad2(db1, 1, H_P),
        _pad2(dw2, H_P, H_P).astype(bf),   _pad2(db2, 1, H_P),
        _pad2(dw3, H_P, IN_P).astype(bf),  _pad2(db3, 1, IN_P),
    )
    return prepared


def vae_forward(x_nchw, prepared_params, eps, *, latent_dim, img_size, batch_tile=256):
    """x_nchw: (B, 1, img, img) float32. Returns (x_hat NCHW, mu, sigma) — all float32."""
    B = x_nchw.shape[0]
    in_dim = img_size * img_size

    (ew1, eb1, ew2, eb2, ew3m, eb3m, ew3s, eb3s,
     dw1, db1, dw2, db2, dw3, db3) = prepared_params
    IN_P, H_P = ew1.shape
    L_P = ew3m.shape[1]

    # Flatten (== torch flatten(1)) and zero-pad the lane axis to the padded feature width.
    x_flat = x_nchw.reshape(B, in_dim).astype(jnp.float32)
    if in_dim < IN_P:
        x_flat = jnp.pad(x_flat, ((0, 0), (0, IN_P - in_dim)))
    eps_p = eps.astype(jnp.float32)
    if latent_dim < L_P:
        eps_p = jnp.pad(eps_p, ((0, 0), (0, L_P - latent_dim)))  # zero noise in padded lanes

    # Batch tiling: single full-batch tile when small; otherwise fixed TB tiles (pad B up).
    if B <= batch_tile:
        TB, B_pad = B, B
    else:
        TB = batch_tile
        B_pad = _round_up(B, TB)
    if B_pad > B:
        x_flat = jnp.pad(x_flat, ((0, B_pad - B), (0, 0)))
        eps_p = jnp.pad(eps_p, ((0, B_pad - B), (0, 0)))
    grid = (B_pad // TB,)

    def row_spec(feat):
        return pl.BlockSpec((TB, feat), lambda i: (i, 0))

    def full_spec(a):
        return pl.BlockSpec(a.shape, lambda i: (0, 0))      # resident across grid steps

    weights = (ew1, eb1, ew2, eb2, ew3m, eb3m, ew3s, eb3s,
               dw1, db1, dw2, db2, dw3, db3)

    # Cost estimate (advisory, helps XLA schedule around the custom call).
    flops = 2 * B_pad * (IN_P * H_P + H_P * H_P + 2 * H_P * L_P
                         + L_P * H_P + H_P * H_P + H_P * IN_P)
    transcendentals = B_pad * (4 * H_P + L_P + IN_P)
    w_bytes = sum(int(w.size) * w.dtype.itemsize for w in weights)
    io_bytes = int(x_flat.size + eps_p.size) * 4 + B_pad * (IN_P + 2 * L_P) * 4
    cost = pl.CostEstimate(flops=int(flops), transcendentals=int(transcendentals),
                           bytes_accessed=int(w_bytes + io_bytes))

    # VMEM budget: resident weights + 2x-buffered activation tiles + intermediate headroom.
    tile_io = 2 * (TB * IN_P * 4 + TB * L_P * 4) + 2 * (TB * IN_P * 4 + 2 * TB * L_P * 4)
    scratch = 6 * TB * max(IN_P, H_P) * 4
    est = w_bytes + tile_io + scratch
    vmem_limit = int(min(max(2 * est, 32 * 1024 * 1024), 48 * 1024 * 1024))  # safe on v5e/v6e/v7x

    x_hat_p, mu_p, sigma_p = pl.pallas_call(
        vae_kernel,
        out_shape=(
            jax.ShapeDtypeStruct((B_pad, IN_P), jnp.float32),
            jax.ShapeDtypeStruct((B_pad, L_P), jnp.float32),
            jax.ShapeDtypeStruct((B_pad, L_P), jnp.float32),
        ),
        grid=grid,
        in_specs=[row_spec(IN_P), row_spec(L_P)] + [full_spec(w) for w in weights],
        out_specs=(row_spec(IN_P), row_spec(L_P), row_spec(L_P)),
        compiler_params=pltpu.CompilerParams(
            dimension_semantics=("parallel",),
            vmem_limit_bytes=vmem_limit),
        cost_estimate=cost,
    )(x_flat, eps_p, *weights)

    # Drop batch / lane padding (padded sigma lanes hold softplus(0) and are discarded here).
    x_hat = x_hat_p[:B, :in_dim].reshape(B, 1, img_size, img_size)
    mu = mu_p[:B, :latent_dim]
    sigma = sigma_p[:B, :latent_dim]
    return x_hat, mu, sigma


if __name__ == "__main__":
    # Small, module-consistent shapes: in_dim == img_size**2
    B = 2
    img_size = 16
    in_dim = img_size * img_size
    hidden_dim = 32
    latent_dim = 8

    key = jax.random.PRNGKey(0)
    k_x, k_eps, k_params = jax.random.split(key, 3)

    x = jax.random.uniform(k_x, (B, 1, img_size, img_size), jnp.float32)   # NCHW
    eps = jax.random.normal(k_eps, (B, latent_dim), jnp.float32)           # reparam noise
    raw_params = init_params(k_params, in_dim, hidden_dim, latent_dim)
    prepared = prepare_params(raw_params, in_dim, hidden_dim, latent_dim)  # one-time preprocessing

    x_hat, mu, sigma = vae_forward(x, prepared, eps,
                                   latent_dim=latent_dim, img_size=img_size)
    jax.block_until_ready((x_hat, mu, sigma))

    assert x_hat.shape == (B, 1, img_size, img_size)
    assert mu.shape == (B, latent_dim)
    assert sigma.shape == (B, latent_dim)
    assert bool(jnp.all(x_hat >= 1e-8)) and bool(jnp.all(x_hat <= 1.0 - 1e-8))
    assert bool(jnp.all(sigma > 0.0))
    assert bool(jnp.all(jnp.isfinite(x_hat))) and bool(jnp.all(jnp.isfinite(mu)))

    print("KERNEL_OK")
</pallas_src>

<mosaic_0001>
module attributes {stable_mosaic.version = 11 : i64} {
  func.func @vae_kernel(%arg0: i32, %arg1: memref<2x256xf32, #tpu.memory_space<vmem>>, %arg2: memref<2x128xf32, #tpu.memory_space<vmem>>, %arg3: memref<256x128xbf16, #tpu.memory_space<vmem>>, %arg4: memref<1x128xf32, #tpu.memory_space<vmem>>, %arg5: memref<128x128xbf16, #tpu.memory_space<vmem>>, %arg6: memref<1x128xf32, #tpu.memory_space<vmem>>, %arg7: memref<128x128xbf16, #tpu.memory_space<vmem>>, %arg8: memref<1x128xf32, #tpu.memory_space<vmem>>, %arg9: memref<128x128xbf16, #tpu.memory_space<vmem>>, %arg10: memref<1x128xf32, #tpu.memory_space<vmem>>, %arg11: memref<128x128xbf16, #tpu.memory_space<vmem>>, %arg12: memref<1x128xf32, #tpu.memory_space<vmem>>, %arg13: memref<128x128xbf16, #tpu.memory_space<vmem>>, %arg14: memref<1x128xf32, #tpu.memory_space<vmem>>, %arg15: memref<128x256xbf16, #tpu.memory_space<vmem>>, %arg16: memref<1x256xf32, #tpu.memory_space<vmem>>, %arg17: memref<2x256xf32, #tpu.memory_space<vmem>>, %arg18: memref<2x128xf32, #tpu.memory_space<vmem>>, %arg19: memref<2x128xf32, #tpu.memory_space<vmem>>) attributes {dimension_semantics = [#tpu.dimension_semantics<parallel>], iteration_bounds = array<i64: 1>, scalar_prefetch = 0 : i64, scratch_operands = 0 : i64, tpu.core_type = #tpu.core_type<tc>, window_params = [{transform_indices = @transform_0, window_bounds = array<i64: 2, 256>}, {transform_indices = @transform_1, window_bounds = array<i64: 2, 128>}, {pipeline_mode = #tpu.pipeline_mode<synchronous>, transform_indices = @transform_2, window_bounds = array<i64: 256, 128>}, {pipeline_mode = #tpu.pipeline_mode<synchronous>, transform_indices = @transform_3, window_bounds = array<i64: 1, 128>}, {pipeline_mode = #tpu.pipeline_mode<synchronous>, transform_indices = @transform_4, window_bounds = array<i64: 128, 128>}, {pipeline_mode = #tpu.pipeline_mode<synchronous>, transform_indices = @transform_5, window_bounds = array<i64: 1, 128>}, {pipeline_mode = #tpu.pipeline_mode<synchronous>, transform_indices = @transform_6, window_bounds = array<i64: 128, 128>}, {pipeline_mode = #tpu.pipeline_mode<synchronous>, transform_indices = @transform_7, window_bounds = array<i64: 1, 128>}, {pipeline_mode = #tpu.pipeline_mode<synchronous>, transform_indices = @transform_8, window_bounds = array<i64: 128, 128>}, {pipeline_mode = #tpu.pipeline_mode<synchronous>, transform_indices = @transform_9, window_bounds = array<i64: 1, 128>}, {pipeline_mode = #tpu.pipeline_mode<synchronous>, transform_indices = @transform_10, window_bounds = array<i64: 128, 128>}, {pipeline_mode = #tpu.pipeline_mode<synchronous>, transform_indices = @transform_11, window_bounds = array<i64: 1, 128>}, {pipeline_mode = #tpu.pipeline_mode<synchronous>, transform_indices = @transform_12, window_bounds = array<i64: 128, 128>}, {pipeline_mode = #tpu.pipeline_mode<synchronous>, transform_indices = @transform_13, window_bounds = array<i64: 1, 128>}, {pipeline_mode = #tpu.pipeline_mode<synchronous>, transform_indices = @transform_14, window_bounds = array<i64: 128, 256>}, {pipeline_mode = #tpu.pipeline_mode<synchronous>, transform_indices = @transform_15, window_bounds = array<i64: 1, 256>}, {transform_indices = @transform_16, window_bounds = array<i64: 2, 256>}, {transform_indices = @transform_17, window_bounds = array<i64: 2, 128>}, {transform_indices = @transform_18, window_bounds = array<i64: 2, 128>}]} {
    %c0 = arith.constant 0 : index
    %c0_0 = arith.constant 0 : index
    %0 = vector.load %arg1[%c0, %c0_0] : memref<2x256xf32, #tpu.memory_space<vmem>>, vector<2x256xf32>
    %1 = arith.truncf %0 : vector<2x256xf32> to vector<2x256xbf16>
    %c0_1 = arith.constant 0 : index
    %c0_2 = arith.constant 0 : index
    %2 = vector.load %arg3[%c0_1, %c0_2] : memref<256x128xbf16, #tpu.memory_space<vmem>>, vector<256x128xbf16>
    %cst = arith.constant dense<0.000000e+00> : vector<2x128xf32>
    %3 = tpu.matmul %1, %2, %cst {dimension_numbers = #tpu.dot_dimension_numbers<[1], [0], [0], [1], [0, 0, 1, 1], [], []>} : vector<2x256xbf16>, vector<256x128xbf16>, vector<2x128xf32> -> vector<2x128xf32>
    %c0_3 = arith.constant 0 : index
    %c0_4 = arith.constant 0 : index
    %4 = vector.load %arg4[%c0_3, %c0_4] : memref<1x128xf32, #tpu.memory_space<vmem>>, vector<1x128xf32>
    %5 = vector.broadcast %4 : vector<1x128xf32> to vector<2x128xf32>
    %6 = arith.addf %3, %5 : vector<2x128xf32>
    %cst_5 = arith.constant 0.000000e+00 : f32
    %7 = vector.broadcast %cst_5 : f32 to vector<2x128xf32>
    %8 = arith.cmpf ogt, %6, %7 : vector<2x128xf32>
    %cst_6 = arith.constant 0.000000e+00 : f32
    %9 = vector.broadcast %cst_6 : f32 to vector<2x128xf32>
    %10 = arith.minimumf %6, %9 : vector<2x128xf32>
    %11 = math.exp %10 : vector<2x128xf32>
    %cst_7 = arith.constant 1.000000e+00 : f32
    %12 = vector.broadcast %cst_7 : f32 to vector<2x128xf32>
    %13 = arith.subf %11, %12 : vector<2x128xf32>
    %14 = arith.select %8, %6, %13 : vector<2x128xi1>, vector<2x128xf32>
    %15 = arith.truncf %14 : vector<2x128xf32> to vector<2x128xbf16>
    %c0_8 = arith.constant 0 : index
    %c0_9 = arith.constant 0 : index
    %16 = vector.load %arg5[%c0_8, %c0_9] : memref<128x128xbf16, #tpu.memory_space<vmem>>, vector<128x128xbf16>
    %cst_10 = arith.constant dense<0.000000e+00> : vector<2x128xf32>
    %17 = tpu.matmul %15, %16, %cst_10 {dimension_numbers = #tpu.dot_dimension_numbers<[1], [0], [0], [1], [0, 0, 1, 1], [], []>} : vector<2x128xbf16>, vector<128x128xbf16>, vector<2x128xf32> -> vector<2x128xf32>
    %c0_11 = arith.constant 0 : index
    %c0_12 = arith.constant 0 : index
    %18 = vector.load %arg6[%c0_11, %c0_12] : memref<1x128xf32, #tpu.memory_space<vmem>>, vector<1x128xf32>
    %19 = vector.broadcast %18 : vector<1x128xf32> to vector<2x128xf32>
    %20 = arith.addf %17, %19 : vector<2x128xf32>
    %21 = math.tanh %20 : vector<2x128xf32>
    %22 = arith.truncf %21 : vector<2x128xf32> to vector<2x128xbf16>
    %c0_13 = arith.constant 0 : index
    %c0_14 = arith.constant 0 : index
    %23 = vector.load %arg7[%c0_13, %c0_14] : memref<128x128xbf16, #tpu.memory_space<vmem>>, vector<128x128xbf16>
    %cst_15 = arith.constant dense<0.000000e+00> : vector<2x128xf32>
    %24 = tpu.matmul %22, %23, %cst_15 {dimension_numbers = #tpu.dot_dimension_numbers<[1], [0], [0], [1], [0, 0, 1, 1], [], []>} : vector<2x128xbf16>, vector<128x128xbf16>, vector<2x128xf32> -> vector<2x128xf32>
    %c0_16 = arith.constant 0 : index
    %c0_17 = arith.constant 0 : index
    %25 = vector.load %arg8[%c0_16, %c0_17] : memref<1x128xf32, #tpu.memory_space<vmem>>, vector<1x128xf32>
    %26 = vector.broadcast %25 : vector<1x128xf32> to vector<2x128xf32>
    %27 = arith.addf %24, %26 : vector<2x128xf32>
    %c0_18 = arith.constant 0 : index
    %c0_19 = arith.constant 0 : index
    %28 = vector.load %arg9[%c0_18, %c0_19] : memref<128x128xbf16, #tpu.memory_space<vmem>>, vector<128x128xbf16>
    %cst_20 = arith.constant dense<0.000000e+00> : vector<2x128xf32>
    %29 = tpu.matmul %22, %28, %cst_20 {dimension_numbers = #tpu.dot_dimension_numbers<[1], [0], [0], [1], [0, 0, 1, 1], [], []>} : vector<2x128xbf16>, vector<128x128xbf16>, vector<2x128xf32> -> vector<2x128xf32>
    %c0_21 = arith.constant 0 : index
    %c0_22 = arith.constant 0 : index
    %30 = vector.load %arg10[%c0_21, %c0_22] : memref<1x128xf32, #tpu.memory_space<vmem>>, vector<1x128xf32>
    %31 = vector.broadcast %30 : vector<1x128xf32> to vector<2x128xf32>
    %32 = arith.addf %29, %31 : vector<2x128xf32>
    %cst_23 = arith.constant 2.000000e+01 : f32
    %33 = vector.broadcast %cst_23 : f32 to vector<2x128xf32>
    %34 = arith.cmpf ogt, %32, %33 : vector<2x128xf32>
    %cst_24 = arith.constant 2.000000e+01 : f32
    %35 = vector.broadcast %cst_24 : f32 to vector<2x128xf32>
    %36 = arith.minimumf %32, %35 : vector<2x128xf32>
    %37 = math.exp %36 : vector<2x128xf32>
    %38 = math.log1p %37 : vector<2x128xf32>
    %39 = arith.select %34, %32, %38 : vector<2x128xi1>, vector<2x128xf32>
    %cst_25 = arith.constant 9.99999997E-7 : f32
    %40 = vector.broadcast %cst_25 : f32 to vector<2x128xf32>
    %41 = arith.addf %40, %39 : vector<2x128xf32>
    %c0_26 = arith.constant 0 : index
    %c0_27 = arith.constant 0 : index
    %42 = vector.load %arg2[%c0_26, %c0_27] : memref<2x128xf32, #tpu.memory_space<vmem>>, vector<2x128xf32>
    %43 = arith.mulf %41, %42 : vector<2x128xf32>
    %44 = arith.addf %27, %43 : vector<2x128xf32>
    %45 = arith.truncf %44 : vector<2x128xf32> to vector<2x128xbf16>
    %c0_28 = arith.constant 0 : index
    %c0_29 = arith.constant 0 : index
    %46 = vector.load %arg11[%c0_28, %c0_29] : memref<128x128xbf16, #tpu.memory_space<vmem>>, vector<128x128xbf16>
    %cst_30 = arith.constant dense<0.000000e+00> : vector<2x128xf32>
    %47 = tpu.matmul %45, %46, %cst_30 {dimension_numbers = #tpu.dot_dimension_numbers<[1], [0], [0], [1], [0, 0, 1, 1], [], []>} : vector<2x128xbf16>, vector<128x128xbf16>, vector<2x128xf32> -> vector<2x128xf32>
    %c0_31 = arith.constant 0 : index
    %c0_32 = arith.constant 0 : index
    %48 = vector.load %arg12[%c0_31, %c0_32] : memref<1x128xf32, #tpu.memory_space<vmem>>, vector<1x128xf32>
    %49 = vector.broadcast %48 : vector<1x128xf32> to vector<2x128xf32>
    %50 = arith.addf %47, %49 : vector<2x128xf32>
    %51 = math.tanh %50 : vector<2x128xf32>
    %52 = arith.truncf %51 : vector<2x128xf32> to vector<2x128xbf16>
    %c0_33 = arith.constant 0 : index
    %c0_34 = arith.constant 0 : index
    %53 = vector.load %arg13[%c0_33, %c0_34] : memref<128x128xbf16, #tpu.memory_space<vmem>>, vector<128x128xbf16>
    %cst_35 = arith.constant dense<0.000000e+00> : vector<2x128xf32>
    %54 = tpu.matmul %52, %53, %cst_35 {dimension_numbers = #tpu.dot_dimension_numbers<[1], [0], [0], [1], [0, 0, 1, 1], [], []>} : vector<2x128xbf16>, vector<128x128xbf16>, vector<2x128xf32> -> vector<2x128xf32>
    %c0_36 = arith.constant 0 : index
    %c0_37 = arith.constant 0 : index
    %55 = vector.load %arg14[%c0_36, %c0_37] : memref<1x128xf32, #tpu.memory_space<vmem>>, vector<1x128xf32>
    %56 = vector.broadcast %55 : vector<1x128xf32> to vector<2x128xf32>
    %57 = arith.addf %54, %56 : vector<2x128xf32>
    %cst_38 = arith.constant 0.000000e+00 : f32
    %58 = vector.broadcast %cst_38 : f32 to vector<2x128xf32>
    %59 = arith.cmpf ogt, %57, %58 : vector<2x128xf32>
    %cst_39 = arith.constant 0.000000e+00 : f32
    %60 = vector.broadcast %cst_39 : f32 to vector<2x128xf32>
    %61 = arith.minimumf %57, %60 : vector<2x128xf32>
    %62 = math.exp %61 : vector<2x128xf32>
    %cst_40 = arith.constant 1.000000e+00 : f32
    %63 = vector.broadcast %cst_40 : f32 to vector<2x128xf32>
    %64 = arith.subf %62, %63 : vector<2x128xf32>
    %65 = arith.select %59, %57, %64 : vector<2x128xi1>, vector<2x128xf32>
    %66 = arith.truncf %65 : vector<2x128xf32> to vector<2x128xbf16>
    %c0_41 = arith.constant 0 : index
    %c0_42 = arith.constant 0 : index
    %67 = vector.load %arg15[%c0_41, %c0_42] : memref<128x256xbf16, #tpu.memory_space<vmem>>, vector<128x256xbf16>
    %cst_43 = arith.constant dense<0.000000e+00> : vector<2x256xf32>
    %68 = tpu.matmul %66, %67, %cst_43 {dimension_numbers = #tpu.dot_dimension_numbers<[1], [0], [0], [1], [0, 0, 1, 1], [], []>} : vector<2x128xbf16>, vector<128x256xbf16>, vector<2x256xf32> -> vector<2x256xf32>
    %c0_44 = arith.constant 0 : index
    %c0_45 = arith.constant 0 : index
    %69 = vector.load %arg16[%c0_44, %c0_45] : memref<1x256xf32, #tpu.memory_space<vmem>>, vector<1x256xf32>
    %70 = vector.broadcast %69 : vector<1x256xf32> to vector<2x256xf32>
    %71 = arith.addf %68, %70 : vector<2x256xf32>
    %cst_46 = arith.constant 0.000000e+00 : f32
    %72 = vector.broadcast %cst_46 : f32 to vector<2x256xf32>
    %73 = arith.subf %72, %71 : vector<2x256xf32>
    %74 = math.exp %73 : vector<2x256xf32>
    %cst_47 = arith.constant 1.000000e+00 : f32
    %75 = vector.broadcast %cst_47 : f32 to vector<2x256xf32>
    %76 = arith.addf %75, %74 : vector<2x256xf32>
    %77 = tpu.reciprocal %76 {approx = true} : vector<2x256xf32> -> vector<2x256xf32>
    %cst_48 = arith.constant 9.99999993E-9 : f32
    %cst_49 = arith.constant 1.000000e+00 : f32
    %78 = vector.broadcast %cst_48 : f32 to vector<2x256xf32>
    %79 = arith.maximumf %78, %77 : vector<2x256xf32>
    %80 = vector.broadcast %cst_49 : f32 to vector<2x256xf32>
    %81 = arith.minimumf %80, %79 : vector<2x256xf32>
    %c0_50 = arith.constant 0 : index
    %c0_51 = arith.constant 0 : index
    %82 = vector.load %arg17[%c0_50, %c0_51] : memref<2x256xf32, #tpu.memory_space<vmem>>, vector<2x256xf32>
    tpu.vector_store %arg17[%c0_50, %c0_51], %81 {strides = array<i32>} : memref<2x256xf32, #tpu.memory_space<vmem>>, vector<2x256xf32>,
    %c0_52 = arith.constant 0 : index
    %c0_53 = arith.constant 0 : index
    %83 = vector.load %arg18[%c0_52, %c0_53] : memref<2x128xf32, #tpu.memory_space<vmem>>, vector<2x128xf32>
    tpu.vector_store %arg18[%c0_52, %c0_53], %27 {strides = array<i32>} : memref<2x128xf32, #tpu.memory_space<vmem>>, vector<2x128xf32>,
    %c0_54 = arith.constant 0 : index
    %c0_55 = arith.constant 0 : index
    %84 = vector.load %arg19[%c0_54, %c0_55] : memref<2x128xf32, #tpu.memory_space<vmem>>, vector<2x128xf32>
    tpu.vector_store %arg19[%c0_54, %c0_55], %41 {strides = array<i32>} : memref<2x128xf32, #tpu.memory_space<vmem>>, vector<2x128xf32>,
    return
  }
  func.func @transform_0(%arg0: i32) -> (i32, i32) {
    %c0_i32 = arith.constant 0 : i32
    %c0_i32_0 = arith.constant 0 : i32
    return %arg0, %c0_i32 : i32, i32
  }
  func.func @transform_1(%arg0: i32) -> (i32, i32) {
    %c0_i32 = arith.constant 0 : i32
    %c0_i32_0 = arith.constant 0 : i32
    return %arg0, %c0_i32 : i32, i32
  }
  func.func @transform_2(%arg0: i32) -> (i32, i32) {
    %c0_i32 = arith.constant 0 : i32
    %c0_i32_0 = arith.constant 0 : i32
    %c0_i32_1 = arith.constant 0 : i32
    return %c0_i32, %c0_i32_0 : i32, i32
  }
  func.func @transform_3(%arg0: i32) -> (i32, i32) {
    %c0_i32 = arith.constant 0 : i32
    %c0_i32_0 = arith.constant 0 : i32
    %c0_i32_1 = arith.constant 0 : i32
    return %c0_i32, %c0_i32_0 : i32, i32
  }
  func.func @transform_4(%arg0: i32) -> (i32, i32) {
    %c0_i32 = arith.constant 0 : i32
    %c0_i32_0 = arith.constant 0 : i32
    %c0_i32_1 = arith.constant 0 : i32
    return %c0_i32, %c0_i32_0 : i32, i32
  }
  func.func @transform_5(%arg0: i32) -> (i32, i32) {
    %c0_i32 = arith.constant 0 : i32
    %c0_i32_0 = arith.constant 0 : i32
    %c0_i32_1 = arith.constant 0 : i32
    return %c0_i32, %c0_i32_0 : i32, i32
  }
  func.func @transform_6(%arg0: i32) -> (i32, i32) {
    %c0_i32 = arith.constant 0 : i32
    %c0_i32_0 = arith.constant 0 : i32
    %c0_i32_1 = arith.constant 0 : i32
    return %c0_i32, %c0_i32_0 : i32, i32
  }
  func.func @transform_7(%arg0: i32) -> (i32, i32) {
    %c0_i32 = arith.constant 0 : i32
    %c0_i32_0 = arith.constant 0 : i32
    %c0_i32_1 = arith.constant 0 : i32
    return %c0_i32, %c0_i32_0 : i32, i32
  }
  func.func @transform_8(%arg0: i32) -> (i32, i32) {
    %c0_i32 = arith.constant 0 : i32
    %c0_i32_0 = arith.constant 0 : i32
    %c0_i32_1 = arith.constant 0 : i32
    return %c0_i32, %c0_i32_0 : i32, i32
  }
  func.func @transform_9(%arg0: i32) -> (i32, i32) {
    %c0_i32 = arith.constant 0 : i32
    %c0_i32_0 = arith.constant 0 : i32
    %c0_i32_1 = arith.constant 0 : i32
    return %c0_i32, %c0_i32_0 : i32, i32
  }
  func.func @transform_10(%arg0: i32) -> (i32, i32) {
    %c0_i32 = arith.constant 0 : i32
    %c0_i32_0 = arith.constant 0 : i32
    %c0_i32_1 = arith.constant 0 : i32
    return %c0_i32, %c0_i32_0 : i32, i32
  }
  func.func @transform_11(%arg0: i32) -> (i32, i32) {
    %c0_i32 = arith.constant 0 : i32
    %c0_i32_0 = arith.constant 0 : i32
    %c0_i32_1 = arith.constant 0 : i32
    return %c0_i32, %c0_i32_0 : i32, i32
  }
  func.func @transform_12(%arg0: i32) -> (i32, i32) {
    %c0_i32 = arith.constant 0 : i32
    %c0_i32_0 = arith.constant 0 : i32
    %c0_i32_1 = arith.constant 0 : i32
    return %c0_i32, %c0_i32_0 : i32, i32
  }
  func.func @transform_13(%arg0: i32) -> (i32, i32) {
    %c0_i32 = arith.constant 0 : i32
    %c0_i32_0 = arith.constant 0 : i32
    %c0_i32_1 = arith.constant 0 : i32
    return %c0_i32, %c0_i32_0 : i32, i32
  }
  func.func @transform_14(%arg0: i32) -> (i32, i32) {
    %c0_i32 = arith.constant 0 : i32
    %c0_i32_0 = arith.constant 0 : i32
    %c0_i32_1 = arith.constant 0 : i32
    return %c0_i32, %c0_i32_0 : i32, i32
  }
  func.func @transform_15(%arg0: i32) -> (i32, i32) {
    %c0_i32 = arith.constant 0 : i32
    %c0_i32_0 = arith.constant 0 : i32
    %c0_i32_1 = arith.constant 0 : i32
    return %c0_i32, %c0_i32_0 : i32, i32
  }
  func.func @transform_16(%arg0: i32) -> (i32, i32) {
    %c0_i32 = arith.constant 0 : i32
    %c0_i32_0 = arith.constant 0 : i32
    return %arg0, %c0_i32 : i32, i32
  }
  func.func @transform_17(%arg0: i32) -> (i32, i32) {
    %c0_i32 = arith.constant 0 : i32
    %c0_i32_0 = arith.constant 0 : i32
    return %arg0, %c0_i32 : i32, i32
  }
  func.func @transform_18(%arg0: i32) -> (i32, i32) {
    %c0_i32 = arith.constant 0 : i32
    %c0_i32_0 = arith.constant 0 : i32
    return %arg0, %c0_i32 : i32, i32
  }
}

</mosaic_0001>

<bundles_post_ra>
// kernel: tpu_custom_call.1
= control target key start
LH: loop header
LB: loop body
LE: loop exit
PB: predicated region body
PF: predicated region fallthrough
CT: control target
= control target key end

     0   :  { %s2042_s0 = inlined_call_operand.hbm [shape: f32[2,256], index: 0, kind: input, shape index: {}]   ;;  %s2043_s1 = inlined_call_operand.hbm [shape: f32[2,128], index: 1, kind: input, shape index: {}]   ;;  %s2044_s2 = inlined_call_operand.hbm [shape: bf16[256,128], index: 2, kind: input, shape index: {}]   ;;  %s2045_s3 = inlined_call_operand.vmem [shape: f32[1,128], index: 3, kind: input, shape index: {}]   ;;  %s2046_s4 = inlined_call_operand.hbm [shape: bf16[128,128], index: 4, kind: input, shape index: {}]   ;;  %s2047_s5 = inlined_call_operand.vmem [shape: f32[1,128], index: 5, kind: input, shape index: {}]   ;;  %s2048_s6 = inlined_call_operand.hbm [shape: bf16[128,128], index: 6, kind: input, shape index: {}]   ;;  %s2049_s7 = inlined_call_operand.vmem [shape: f32[1,128], index: 7, kind: input, shape index: {}]   ;;  %s2050_s8 = inlined_call_operand.hbm [shape: bf16[128,128], index: 8, kind: input, shape index: {}]   ;;  %s2051_s9 = inlined_call_operand.vmem [shape: f32[1,128], index: 9, kind: input, shape index: {}]   ;;  %s2052_s10 = inlined_call_operand.hbm [shape: bf16[128,128], index: 10, kind: input, shape index: {}]   ;;  %s2053_s11 = inlined_call_operand.vmem [shape: f32[1,128], index: 11, kind: input, shape index: {}]   ;;  %s2054_s12 = inlined_call_operand.hbm [shape: bf16[128,128], index: 12, kind: input, shape index: {}]   ;;  %s2055_s13 = inlined_call_operand.vmem [shape: f32[1,128], index: 13, kind: input, shape index: {}]   ;;  %s2056_s14 = inlined_call_operand.hbm [shape: bf16[128,256], index: 14, kind: input, shape index: {}]   ;;  %s2057_s15 = inlined_call_operand.vmem [shape: f32[1,256], index: 15, kind: input, shape index: {}]   ;;  %s2058_s16 = inlined_call_operand.hbm [shape: f32[2,256], index: 16, kind: output, shape index: {0}]   ;;  %s2059_s17 = inlined_call_operand.hbm [shape: f32[2,128], index: 17, kind: output, shape index: {1}]   ;;  %s2060_s18 = inlined_call_operand.hbm [shape: f32[2,128], index: 18, kind: output, shape index: {2}]  }
   0x1   :  { %2061 = sst [smem:[#allocation28_spill]] %s2042_s0 }
   0x2   :  { %2062 = sst [smem:[#allocation29_spill]] %s2043_s1 }
   0x3   :  { %2063 = sst [smem:[#allocation30_spill]] %s2044_s2 }
   0x4   :  { %24 = vsyncpa [#allocation3], 0 }
   0x5   :  { %25 = vsyncpa [#allocation6], 0 }
   0x6   :  { %26 = vsyncpa [#allocation9], 0 }
   0x7   :  { %27 = vsyncpa [#allocation12], 0 }
   0x8   :  { %28 = vsyncpa [#allocation15], 0 }
   0x9   :  { %29 = vsyncpa [#allocation4], 0 }
   0xa   :  { %30 = vsyncpa [#allocation19], 0  ;;  %s1803_s27 = smov [#allocation5]  }
   0xb   :  { %s47_s28 = sshll.u32 %s1803_s27, 4  ;;  %s48_s28 = int_to_ptr.vmem [resolvable:$true] %s47_s28 }
   0xc   :  { %s1557_s29 = scalar_lea.vmem %s48_s28, 32  ;;  %p1562_p1 = scmp.lt.s32.totalorder %s48_s28, %s48_s28 }
   0xd   :  { %p1558_p0 = scmp.ne.s32.totalorder %s48_s28, %s1557_s29  ;;  %p1563_p2 = scmp.lt.s32.totalorder %s1557_s29, %s1557_s29 }
   0xf   :  { %p1564_p3 = por %p1563_p2, %p1562_p1 }
  0x11   :  { %p1565_p4 = pnand %p1564_p3, %p1558_p0 }
  0x13   :  { %1568 = shalt.err (!%p1565_p4)
}
  0x14   :  { %s2064_s19 = sld [smem:[#allocation29_spill]]  ;;  %s1804_s1 = smov [#allocation8]  }
  0x15   :  { %s70_s20 = sshll.u32 %s1804_s1, 4  ;;  %s1805_s21 = smov [#allocation11]   ;;  %s71_s20 = int_to_ptr.vmem [resolvable:$true] %s70_s20 }
  0x16   :  { %s98_s22 = sshll.u32 %s1805_s21, 4  ;;  %s1577_s2 = scalar_lea.vmem %s71_s20, 1024  ;;  %s99_s22 = int_to_ptr.vmem [resolvable:$true] %s98_s22 }
  0x17   :  { %p1578_p5 = scmp.ne.s32.totalorder %s71_s20, %s1577_s2  ;;  %p1582_p6 = scmp.lt.s32.totalorder %s71_s20, %s71_s20 }
  0x18   :  { %p1583_p7 = scmp.lt.s32.totalorder %s1577_s2, %s1577_s2 }
  0x1a   :  { %50 = dma.hbm_to_vmem [thread:$0]  %s2064_s19, 32, %s48_s28, [#allocation6]  }
  0x1b   :  { %p1584_p8 = por %p1583_p7, %p1582_p6 }
  0x1d   :  { %p1585_p9 = pnand %p1584_p8, %p1578_p5 }
  0x1f   :  { %1588 = shalt.err (!%p1585_p9)
}
  0x20   :  { %s1806_s23 = smov 64   ;;  %s1807_s24 = smov 4  }
  0x21   :  { %76 = dma.hbm_to_vmem [thread:$0]  %s2046_s4, 1024, %s71_s20, [#allocation9], %s1806_s23, %s1806_s23, %s1807_s24  }
  0x22   :  { %s1597_s27 = scalar_lea.vmem %s99_s22, 1024  ;;  %p1602_p11 = scmp.lt.s32.totalorder %s99_s22, %s99_s22 }
  0x23   :  { %p1598_p10 = scmp.ne.s32.totalorder %s99_s22, %s1597_s27  ;;  %p1603_p12 = scmp.lt.s32.totalorder %s1597_s27, %s1597_s27 }
  0x25   :  { %p1604_p13 = por %p1603_p12, %p1602_p11 }
  0x27   :  { %p1605_p0 = pnand %p1604_p13, %p1598_p10 }
  0x29   :  { %1608 = shalt.err (!%p1605_p0)
}
  0x2a   :  { %104 = dma.hbm_to_vmem [thread:$0]  %s2050_s8, 1024, %s99_s22, [#allocation12], %s1806_s23, %s1806_s23, %s1807_s24  }
  0x2b   :  { %s1808_s30 = smov [#allocation14]   ;;  %s1809_s19 = smov [#allocation2]  }
  0x2c   :  { %s126_s0 = sshll.u32 %s1808_s30, 4  ;;  %s37_s4 = sshll.u32 %s1809_s19, 4  ;;  %s127_s0 = int_to_ptr.vmem [resolvable:$true] %s126_s0  ;;  %s38_s4 = int_to_ptr.vmem [resolvable:$true] %s37_s4 }
  0x2d   :  { %s1617_s1 = scalar_lea.vmem %s127_s0, 1024  ;;  %p1622_p2 = scmp.lt.s32.totalorder %s127_s0, %s127_s0 }
  0x2e   :  { %p1618_p1 = scmp.ne.s32.totalorder %s127_s0, %s1617_s1  ;;  %p1623_p3 = scmp.lt.s32.totalorder %s1617_s1, %s1617_s1 }
  0x30   :  { %p1624_p4 = por %p1623_p3, %p1622_p2 }
  0x32   :  { %p1625_p5 = pnand %p1624_p4, %p1618_p1 }
  0x34   :  { %1628 = shalt.err (!%p1625_p5)
}
  0x35   :  { %132 = dma.hbm_to_vmem [thread:$0]  %s2054_s12, 1024, %s127_s0, [#allocation15], %s1806_s23, %s1806_s23, %s1807_s24  }
  0x36   :  { %s1637_s8 = scalar_lea.vmem %s38_s4, 64  ;;  %p1642_p7 = scmp.lt.s32.totalorder %s38_s4, %s38_s4 }
  0x37   :  { %p1638_p6 = scmp.ne.s32.totalorder %s38_s4, %s1637_s8  ;;  %p1643_p8 = scmp.lt.s32.totalorder %s1637_s8, %s1637_s8 }
  0x39   :  { %p1644_p9 = por %p1643_p8, %p1642_p7 }
  0x3b   :  { %p1645_p10 = pnand %p1644_p9, %p1638_p6 }
  0x3d   :  { %1648 = shalt.err (!%p1645_p10)
}
  0x3e   :  { %s2065_s25 = sld [smem:[#allocation28_spill]]  ;;  %s1810_s26 = smov [#allocation7]  }
  0x3f   :  { %s56_s27 = sshll.u32 %s1810_s26, 4  ;;  %s1811_s28 = smov [#allocation10]   ;;  %s57_s27 = int_to_ptr.vmem [resolvable:$true] %s56_s27 }
  0x40   :  { %s84_s29 = sshll.u32 %s1811_s28, 4  ;;  %s1657_s30 = scalar_lea.vmem %s57_s27, 2048  ;;  %s85_s29 = int_to_ptr.vmem [resolvable:$true] %s84_s29 }
  0x41   :  { %p1658_p11 = scmp.ne.s32.totalorder %s57_s27, %s1657_s30  ;;  %p1662_p12 = scmp.lt.s32.totalorder %s57_s27, %s57_s27 }
  0x42   :  { %p1663_p13 = scmp.lt.s32.totalorder %s1657_s30, %s1657_s30 }
  0x44   :  { %40 = dma.hbm_to_vmem [thread:$0]  %s2065_s25, 64, %s38_s4, [#allocation3]  }
  0x45   :  { %p1664_p0 = por %p1663_p13, %p1662_p12 }
  0x47   :  { %p1665_p1 = pnand %p1664_p0, %p1658_p11 }
  0x49   :  { %1668 = shalt.err (!%p1665_p1)
}
  0x4a   :  { %s2066_s19 = sld [smem:[#allocation30_spill]]  ;;  %s1677_s4 = scalar_lea.vmem %s85_s29, 1024 }
  0x4b   :  { %p1678_p2 = scmp.ne.s32.totalorder %s85_s29, %s1677_s4  ;;  %p1682_p3 = scmp.lt.s32.totalorder %s85_s29, %s85_s29 }
  0x4c   :  { %p1683_p4 = scmp.lt.s32.totalorder %s1677_s4, %s1677_s4 }
  0x4e   :  { %p1684_p5 = por %p1683_p4, %p1682_p3 }
  0x50   :  { %62 = dma.hbm_to_vmem [thread:$0]  %s2066_s19, 2048, %s57_s27, [#allocation6], %s1806_s23, %s1806_s23, %s1807_s24  }
  0x51   :  { %p1685_p6 = pnand %p1684_p5, %p1678_p2 }
  0x53   :  { %1688 = shalt.err (!%p1685_p6)
}
  0x54   :  { %90 = dma.hbm_to_vmem [thread:$0]  %s2048_s6, 1024, %s85_s29, [#allocation9], %s1806_s23, %s1806_s23, %s1807_s24  }
  0x55   :  { %s1812_s21 = smov [#allocation13]   ;;  %s1813_s22 = smov [#allocation16]  }
  0x56   :  { %s112_s8 = sshll.u32 %s1812_s21, 4  ;;  %s140_s2 = sshll.u32 %s1813_s22, 4  ;;  %s113_s8 = int_to_ptr.vmem [resolvable:$true] %s112_s8  ;;  %s141_s2 = int_to_ptr.vmem [resolvable:$true] %s140_s2 }
  0x57   :  { %s1697_s25 = scalar_lea.vmem %s113_s8, 1024  ;;  %p1702_p8 = scmp.lt.s32.totalorder %s113_s8, %s113_s8 }
  0x58   :  { %p1698_p7 = scmp.ne.s32.totalorder %s113_s8, %s1697_s25  ;;  %p1703_p9 = scmp.lt.s32.totalorder %s1697_s25, %s1697_s25 }
  0x5a   :  { %p1704_p10 = por %p1703_p9, %p1702_p8 }
  0x5c   :  { %p1705_p11 = pnand %p1704_p10, %p1698_p7 }
  0x5e   :  { %1708 = shalt.err (!%p1705_p11)
}
  0x5f   :  { %118 = dma.hbm_to_vmem [thread:$0]  %s2052_s10, 1024, %s113_s8, [#allocation12], %s1806_s23, %s1806_s23, %s1807_s24  }
  0x60   :  { %s1717_s6 = scalar_lea.vmem %s141_s2, 2048  ;;  %p1722_p13 = scmp.lt.s32.totalorder %s141_s2, %s141_s2 }
  0x61   :  { %p1718_p12 = scmp.ne.s32.totalorder %s141_s2, %s1717_s6  ;;  %p1723_p0 = scmp.lt.s32.totalorder %s1717_s6, %s1717_s6 }
  0x63   :  { %p1724_p1 = por %p1723_p0, %p1722_p13 }
  0x65   :  { %p1725_p2 = pnand %p1724_p1, %p1718_p12 }
  0x67   :  { %1728 = shalt.err (!%p1725_p2)
}
  0x68   :  { %s1814_s28 = smov 128   ;;  %s1815_s29 = smov 8  }
  0x69   :  { %146 = dma.hbm_to_vmem [thread:$0]  %s2056_s14, 2048, %s141_s2, [#allocation15], %s1814_s28, %s1814_s28, %s1815_s29  }
  0x6a   :  { %1789 = dma.done.wait [#allocation3], 64  }
  0x6b   :  { %1790 = vsyncadd [#allocation3], 4294967232 }
  0x6c   :  { %1791 = dma.done.wait [#allocation6], 2080  }
  0x6d   :  { %1792 = vsyncadd [#allocation6], 4294965216 }
  0x6e   :  { %1793 = dma.done.wait [#allocation9], 2048  }
  0x6f   :  { %1794 = vsyncadd [#allocation9], 4294965248 }
  0x70   :  { %1795 = dma.done.wait [#allocation12], 2048  }
  0x71   :  { %1796 = vsyncadd [#allocation12], 4294965248 }
  0x72   :  { %1797 = dma.done.wait [#allocation15], 3072  }
  0x73   :  { %1798 = vsyncadd [#allocation15], 4294964224  ;;  %v1816_v0 = vmov 0.0   ;;  %v1449_v1 = vld [vmem:[#allocation7 + $0x78] sm:$0xff]   ;;  %v1451_v3 = vld [vmem:[#allocation7 + $0x70] sm:$0xff]   ;;  %vm1817_vm0 = vmmov 0  }
  0x74   :  { %1330 = vmatprep.subr.bf16.mxu1 %v1816_v0  ;;  %v1450_v2 = vld [vmem:[#allocation7 + $0x38] sm:$0xff]   ;;  %1263 = vmatprep.subr.bf16.mxu0 %v1449_v1  ;;  %v1452_v4 = vld [vmem:[#allocation7 + $0x30] sm:$0xff]   ;;  %v1453_v5 = vld [vmem:[#allocation7 + $0x68] sm:$0xff]   ;;  %s1819_s1 = smov [#allocation18]  }
  0x75   :  { %1264 = vmatpush3.bf16.msra.mxu0 %v1450_v2  ;;  %v1454_v6 = vld [vmem:[#allocation7 + $0x28] sm:$0xff]   ;;  %v1455_v7 = vld [vmem:[#allocation7 + $0x60] sm:$0xff]   ;;  %v1457_v9 = vld [vmem:[#allocation7 + $0x58] sm:$0xff]   ;;  %1346 = vmatprep.mubr.msk.bf16.mxu1 %vm1817_vm0, %v1816_v0  ;;  %s1151_s20 = sshll.u32 %s1819_s1, 4  ;;  %s1152_s20 = int_to_ptr.vmem [resolvable:$true] %s1151_s20 }
  0x76   :  { %1265 = vmatprep.subr.bf16.mxu0 %v1451_v3  ;;  %v1456_v8 = vld [vmem:[#allocation7 + $0x20] sm:$0xff]   ;;  %v1458_v10 = vld [vmem:[#allocation7 + $0x18] sm:$0xff]   ;;  %v1459_v11 = vld [vmem:[#allocation7 + $0x50] sm:$0xff]   ;;  %s1729_s21 = scalar_lea.vmem %s1152_s20, 32  ;;  %p1734_p4 = scmp.lt.s32.totalorder %s1152_s20, %s1152_s20 }
  0x77   :  { %v1181_v12 = vld.sshfl [vmem:[#allocation2] sm:$0x33 pattern:$0x76325410]  ;;  %v1460_v13 = vld [vmem:[#allocation7 + $0x10] sm:$0xff]   ;;  %v1461_v16 = vld [vmem:[#allocation7 + $0x48] sm:$0xff]   ;;  %p1730_p3 = scmp.ne.s32.totalorder %s1152_s20, %s1729_s21  ;;  %p1735_p5 = scmp.lt.s32.totalorder %s1729_s21, %s1729_s21 }
  0x78   :  { %v186_v14 = vcombine.high %v1181_v12, %v1181_v12  ;;  %v1465_v15 = vld [vmem:[#allocation8 + $0x38] sm:$0xff]   ;;  %v1462_v18 = vld [vmem:[#allocation7 + $0x8] sm:$0xff]   ;;  %v1463_v19 = vld [vmem:[#allocation7 + $0x40] sm:$0xff]   ;;  %v189_v21 = vpack.c.bf16 %v1181_v12, %v1181_v12 }
  0x79   :  { %1266 = vmatpush3.bf16.msra.mxu0 %v1452_v4  ;;  %1331 = vmatpush3.bf16.msra.mxu1 %v1465_v15  ;;  %v1464_v20 = vld [vmem:[#allocation7] sm:$0xff]   ;;  %v1466_v22 = vld [vmem:[#allocation8 + $0x30] sm:$0xff]   ;;  %v1467_v23 = vld [vmem:[#allocation8 + $0x28] sm:$0xff]   ;;  %p1736_p6 = por %p1735_p5, %p1734_p4 }
  0x7a   :  { %1267 = vmatprep.subr.bf16.mxu0 %v1453_v5  ;;  %v190_v17 = vpack.c.bf16 %v186_v14, %v186_v14  ;;  %1332 = vmatprep.subr.bf16.mxu1 %v1816_v0  ;;  %v1468_v24 = vld [vmem:[#allocation8 + $0x20] sm:$0xff]   ;;  %v1469_v25 = vld [vmem:[#allocation8 + $0x18] sm:$0xff]   ;;  %v1470_v26 = vld [vmem:[#allocation8 + $0x10] sm:$0xff]  }
  0x7b   :  { %v1471_v27 = vld [vmem:[#allocation8 + $0x8] sm:$0xff]   ;;  %v1472_v28 = vld [vmem:[#allocation8] sm:$0xff]   ;;  %v1473_v29 = vld [vmem:[#allocation10 + $0x38] sm:$0xff]   ;;  %p1737_p7 = pnand %p1736_p6, %p1730_p3 }
  0x7c   :  { %358 = vmatprep.mubr.bf16.mxu0 %v190_v17  ;;  %v1475_v30 = vld [vmem:[#allocation10 + $0x30] sm:$0xff]   ;;  %v1477_v31 = vld [vmem:[#allocation10 + $0x28] sm:$0xff]   ;;  %v1182_v33 = vld [vmem:[%s2045_s3] ss:$0 sm:$0xff] }
  0x7d   :  { %1268 = vmatpush3.bf16.msra.mxu0 %v1454_v6  ;;  %1333 = vmatpush3.bf16.msra.mxu1 %v1466_v22  ;;  %v1474_v44 = vld [vmem:[#allocation11 + $0x38] sm:$0xff]   ;;  %v1476_v46 = vld [vmem:[#allocation11 + $0x30] sm:$0xff]   ;;  %v1478_v47 = vld [vmem:[#allocation11 + $0x28] sm:$0xff]  }
  0x7e   :  { %1269 = vmatprep.subr.bf16.mxu0 %v1455_v7  ;;  %1334 = vmatprep.subr.bf16.mxu1 %v1816_v0  ;;  %v1479_v48 = vld [vmem:[#allocation10 + $0x20] sm:$0xff]   ;;  %v1481_v50 = vld [vmem:[#allocation10 + $0x18] sm:$0xff]   ;;  %v1483_v52 = vld [vmem:[#allocation10 + $0x10] sm:$0xff]  }
  0x7f   :  { %v1480_v49 = vld [vmem:[#allocation11 + $0x20] sm:$0xff]   ;;  %v1482_v51 = vld [vmem:[#allocation11 + $0x18] sm:$0xff]   ;;  %v1484_v53 = vld [vmem:[#allocation11 + $0x10] sm:$0xff]  }
  0x80   :  { %v1485_v54 = vld [vmem:[#allocation10 + $0x8] sm:$0xff]   ;;  %v1487_v56 = vld [vmem:[#allocation10] sm:$0xff]   ;;  %v1200_v58 = vld [vmem:[%s2047_s5] ss:$0 sm:$0xff] }
  0x81   :  { %1270 = vmatpush3.bf16.msra.mxu0 %v1456_v8  ;;  %1335 = vmatpush3.bf16.msra.mxu1 %v1467_v23  ;;  %v1486_v55 = vld [vmem:[#allocation11 + $0x8] sm:$0xff]   ;;  %v1488_v57 = vld [vmem:[#allocation11] sm:$0xff]   ;;  %v1489_v3 = vld [vmem:[#allocation13 + $0x38] sm:$0xff]  }
  0x82   :  { %1271 = vmatprep.subr.bf16.mxu0 %v1457_v9  ;;  %1336 = vmatprep.subr.bf16.mxu1 %v1816_v0  ;;  %v1490_v4 = vld [vmem:[#allocation13 + $0x30] sm:$0xff]   ;;  %v1491_v5 = vld [vmem:[#allocation13 + $0x28] sm:$0xff]   ;;  %v1492_v6 = vld [vmem:[#allocation13 + $0x20] sm:$0xff]  }
  0x83   :  { %v1493_v7 = vld [vmem:[#allocation13 + $0x18] sm:$0xff]   ;;  %v1494_v8 = vld [vmem:[#allocation13 + $0x10] sm:$0xff]   ;;  %v1495_v9 = vld [vmem:[#allocation13 + $0x8] sm:$0xff]  }
  0x84   :  { %v1498_v12 = vld [vmem:[#allocation14 + $0x30] sm:$0xff]   ;;  %v1209_v14 = vld [vmem:[%s2049_s7] ss:$0 sm:$0xff] }
  0x85   :  { %1272 = vmatpush3.bf16.msra.mxu0 %v1458_v10  ;;  %1337 = vmatpush3.bf16.msra.mxu1 %v1468_v24  ;;  %v1496_v10 = vld [vmem:[#allocation13] sm:$0xff]   ;;  %v1218_v15 = vld [vmem:[%s2051_s9] ss:$0 sm:$0xff] }
  0x86   :  { %1273 = vmatprep.subr.bf16.mxu0 %v1459_v11  ;;  %1338 = vmatprep.subr.bf16.mxu1 %v1816_v0  ;;  %v1497_v11 = vld [vmem:[#allocation14 + $0x38] sm:$0xff]  }
  0x89   :  { %1274 = vmatpush3.bf16.msra.mxu0 %v1460_v13  ;;  %1339 = vmatpush3.bf16.msra.mxu1 %v1469_v25  ;;  %v1499_v13 = vld [vmem:[#allocation14 + $0x28] sm:$0xff]  }
  0x8a   :  { %1275 = vmatprep.subr.bf16.mxu0 %v1461_v16  ;;  %1340 = vmatprep.subr.bf16.mxu1 %v1816_v0 }
  0x8d   :  { %1276 = vmatpush3.bf16.msra.mxu0 %v1462_v18  ;;  %1341 = vmatpush3.bf16.msra.mxu1 %v1470_v26 }
  0x8e   :  { %1277 = vmatprep.subr.bf16.mxu0 %v1463_v19  ;;  %1342 = vmatprep.subr.bf16.mxu1 %v1816_v0 }
  0x91   :  { %1278 = vmatpush3.bf16.msra.mxu0 %v1464_v20  ;;  %1343 = vmatpush3.bf16.msra.mxu1 %v1471_v27 }
  0x92   :  { %1350 = vmatprep.subr.bf16.mxu0 %v1816_v0  ;;  %1344 = vmatprep.subr.bf16.mxu1 %v1816_v0 }
  0x94   :  { %359 = vmatmul.mubr.bf16.vlgmr.msra.gmra.mxu0 %v189_v21 }
  0x95   :  { %1366 = vmatprep.mubr.msk.bf16.mxu0 %vm1817_vm0, %v1816_v0  ;;  %1345 = vmatpush3.bf16.msra.mxu1 %v1472_v28 }
  0x96   :  { %1370 = vmatprep.subr.bf16.mxu1 %v1816_v0  ;;  %1351 = vmatpush3.bf16.msra.mxu0 %v1473_v29 }
  0x97   :  { %1352 = vmatprep.subr.bf16.mxu0 %v1816_v0 }
  0x9a   :  { %1353 = vmatpush3.bf16.msra.mxu0 %v1475_v30 }
  0x9b   :  { %1354 = vmatprep.subr.bf16.mxu0 %v1816_v0 }
  0x9e   :  { %1355 = vmatpush3.bf16.msra.mxu0 %v1477_v31 }
  0x9f   :  { %1356 = vmatprep.subr.bf16.mxu0 %v1816_v0 }
  0xa2   :  { %1357 = vmatpush3.bf16.msra.mxu0 %v1479_v48  ;;  %v1505_v48 = vld [vmem:[#allocation16 + $0x70] ss:$8 sps:$4 sm:$0xff]  }
  0xa3   :  { %1358 = vmatprep.subr.bf16.mxu0 %v1816_v0 }
  0xa6   :  { %1359 = vmatpush3.bf16.msra.mxu0 %v1481_v50  ;;  %v1510_v50 = vld [vmem:[#allocation16 + $0x64] ss:$8 sps:$4 sm:$0xff]  }
  0xa7   :  { %1360 = vmatprep.subr.bf16.mxu0 %v1816_v0 }
  0xaa   :  { %1361 = vmatpush3.bf16.msra.mxu0 %v1483_v52  ;;  %v1227_v52 = vld [vmem:[%s2053_s11] ss:$0 sm:$0xff] }
  0xab   :  { %1362 = vmatprep.subr.bf16.mxu0 %v1816_v0 }
  0xae   :  { %1363 = vmatpush3.bf16.msra.mxu0 %v1485_v54 }
  0xaf   :  { %1364 = vmatprep.subr.bf16.mxu0 %v1816_v0 }
  0xb2   :  { %1365 = vmatpush3.bf16.msra.mxu0 %v1487_v56 }
  0xb3   :  { %1390 = vmatprep.subr.bf16.mxu0 %v1816_v0 }
 0x154   :  { %v1279_v32 = vpop.f32.mrf.mxu0 }
 0x156   :  { %v1280_v34 = vpop.f32.mrf.mxu0 }
 0x157   :  { %v1281_v35 = vadd.f32 %v1280_v34, %v1279_v32 }
 0x158   :  { %v1282_v36 = vpop.f32.mrf.mxu0 }
 0x159   :  { %v361_v37 = vadd.f32 %v1281_v35, %v1182_v33 }
 0x15a   :  { %v1283_v38 = vpop.f32.mrf.mxu0 }
 0x15b   :  { %v367_v39 = vmin.f32 %v361_v37, 0.0  ;;  %vm366_vm1 = vcmp.gt.f32.partialorder %v361_v37, 0.0  ;;  %v723_v38 = vld [vmem:[#allocation5] sm:$0x3] }
 0x15d   :  { %v368_v40 = vmul.f32 1.442695, %v367_v39 }
 0x15f   :  { %1529 = vpow2.f32 %v368_v40 }
 0x16c   :  { %v1530_v41 = vpop.eup %1529 }
 0x16d   :  { %v1199_v42 = vadd.f32 -1.0, %v1530_v41 }
 0x16f   :  { %v371_v43 = vsel %vm366_vm1, %v361_v37, %v1199_v42 }
 0x170   :  { %v372_v45 = vpack.c.bf16 %v371_v43, %v371_v43  ;;  %v1500_v43 = vld [vmem:[#allocation14 + $0x20] sm:$0xff]  }
 0x172   :  { %1347 = vmatmul.mubr.bf16.vlgmr.msra.gmra.mxu1 %v372_v45  ;;  %v1502_v45 = vld [vmem:[#allocation14 + $0x10] sm:$0xff]  }
 0x173   :  { %1371 = vmatpush3.bf16.msra.mxu1 %v1474_v44  ;;  %1386 = vmatprep.mubr.msk.bf16.mxu1 %vm1817_vm0, %v1816_v0  ;;  %v1501_v44 = vld [vmem:[#allocation14 + $0x18] sm:$0xff]  }
 0x174   :  { %1372 = vmatprep.subr.bf16.mxu1 %v1816_v0 }
 0x177   :  { %1373 = vmatpush3.bf16.msra.mxu1 %v1476_v46  ;;  %v1503_v46 = vld [vmem:[#allocation14 + $0x8] sm:$0xff]  }
 0x178   :  { %1374 = vmatprep.subr.bf16.mxu1 %v1816_v0 }
 0x17b   :  { %1375 = vmatpush3.bf16.msra.mxu1 %v1478_v47  ;;  %v1504_v47 = vld [vmem:[#allocation14] sm:$0xff]  }
 0x17c   :  { %1376 = vmatprep.subr.bf16.mxu1 %v1816_v0 }
 0x17f   :  { %1377 = vmatpush3.bf16.msra.mxu1 %v1480_v49  ;;  %v1507_v49 = vld [vmem:[#allocation16 + $0x74] ss:$8 sps:$4 sm:$0xff]  }
 0x180   :  { %1378 = vmatprep.subr.bf16.mxu1 %v1816_v0 }
 0x183   :  { %1379 = vmatpush3.bf16.msra.mxu1 %v1482_v51  ;;  %v1508_v51 = vld [vmem:[#allocation16 + $0x60] ss:$8 sps:$4 sm:$0xff]  }
 0x184   :  { %1380 = vmatprep.subr.bf16.mxu1 %v1816_v0 }
 0x187   :  { %1381 = vmatpush3.bf16.msra.mxu1 %v1484_v53 }
 0x188   :  { %1382 = vmatprep.subr.bf16.mxu1 %v1816_v0 }
 0x18b   :  { %1383 = vmatpush3.bf16.msra.mxu1 %v1486_v55 }
 0x18c   :  { %1384 = vmatprep.subr.bf16.mxu1 %v1816_v0 }
 0x18f   :  { %1385 = vmatpush3.bf16.msra.mxu1 %v1488_v57 }
 0x190   :  { %1410 = vmatprep.subr.bf16.mxu1 %v1816_v0 }
 0x232   :  { %v478_v59 = vpop.f32.mrf.mxu1 }
 0x233   :  { %v479_v60 = vadd.f32 %v1200_v58, %v478_v59  ;;  %v1513_v59 = vld [vmem:[#allocation16 + $0x54] ss:$8 sps:$4 sm:$0xff]  }
 0x234   :  { %v1348_v61 = vpop.f32.mrf.mxu1 }
 0x235   :  { %1531 = vtanh.f32 %v479_v60  ;;  %v1511_v60 = vld [vmem:[#allocation16 + $0x50] ss:$8 sps:$4 sm:$0xff]   ;;  %v1516_v61 = vld [vmem:[#allocation16 + $0x44] ss:$8 sps:$4 sm:$0xff]  }
 0x236   :  { %v481_v62 = vpop.f32.mrf.mxu1 }
 0x237   :  { %v1514_v62 = vld [vmem:[#allocation16 + $0x40] ss:$8 sps:$4 sm:$0xff]  }
 0x238   :  { %v1349_v63 = vpop.f32.mrf.mxu1 }
 0x239   :  { %v1519_v63 = vld [vmem:[#allocation16 + $0x34] ss:$8 sps:$4 sm:$0xff]  }
 0x242   :  { %v1532_v1 = vpop.eup %1531 }
 0x243   :  { %v485_v2 = vpack.c.bf16 %v1532_v1, %v1532_v1  ;;  %v1517_v1 = vld [vmem:[#allocation16 + $0x30] ss:$8 sps:$4 sm:$0xff]  }
 0x245   :  { %1367 = vmatmul.mubr.bf16.vlgmr.msra.gmra.mxu0 %v485_v2  ;;  %1387 = vmatmul.mubr.bf16.vlgmr.msra.gmra.mxu1 %v485_v2  ;;  %v1522_v2 = vld [vmem:[#allocation16 + $0x24] ss:$8 sps:$4 sm:$0xff]  }
 0x246   :  { %1406 = vmatprep.mubr.msk.bf16.mxu0 %vm1817_vm0, %v1816_v0  ;;  %1426 = vmatprep.mubr.msk.bf16.mxu1 %vm1817_vm0, %v1816_v0 }
 0x247   :  { %1391 = vmatpush3.bf16.msra.mxu0 %v1489_v3  ;;  %1411 = vmatpush3.bf16.msra.mxu1 %v1497_v11  ;;  %v1520_v3 = vld [vmem:[#allocation16 + $0x20] ss:$8 sps:$4 sm:$0xff]  }
 0x248   :  { %1392 = vmatprep.subr.bf16.mxu0 %v1816_v0  ;;  %1412 = vmatprep.subr.bf16.mxu1 %v1816_v0 }
 0x24b   :  { %1393 = vmatpush3.bf16.msra.mxu0 %v1490_v4  ;;  %1413 = vmatpush3.bf16.msra.mxu1 %v1498_v12  ;;  %v1525_v4 = vld [vmem:[#allocation16 + $0x14] ss:$8 sps:$4 sm:$0xff]  }
 0x24c   :  { %1394 = vmatprep.subr.bf16.mxu0 %v1816_v0  ;;  %1414 = vmatprep.subr.bf16.mxu1 %v1816_v0 }
 0x24f   :  { %1395 = vmatpush3.bf16.msra.mxu0 %v1491_v5  ;;  %1415 = vmatpush3.bf16.msra.mxu1 %v1499_v13  ;;  %v1523_v5 = vld [vmem:[#allocation16 + $0x10] ss:$8 sps:$4 sm:$0xff]  }
 0x250   :  { %1396 = vmatprep.subr.bf16.mxu0 %v1816_v0  ;;  %1416 = vmatprep.subr.bf16.mxu1 %v1816_v0 }
 0x253   :  { %1397 = vmatpush3.bf16.msra.mxu0 %v1492_v6  ;;  %1417 = vmatpush3.bf16.msra.mxu1 %v1500_v43  ;;  %v1528_v6 = vld [vmem:[#allocation16 + $0x4] ss:$8 sps:$4 sm:$0xff]  }
 0x254   :  { %1398 = vmatprep.subr.bf16.mxu0 %v1816_v0  ;;  %1418 = vmatprep.subr.bf16.mxu1 %v1816_v0 }
 0x257   :  { %1399 = vmatpush3.bf16.msra.mxu0 %v1493_v7  ;;  %1419 = vmatpush3.bf16.msra.mxu1 %v1501_v44  ;;  %v1526_v7 = vld [vmem:[#allocation16] ss:$8 sps:$4 sm:$0xff]  }
 0x258   :  { %1400 = vmatprep.subr.bf16.mxu0 %v1816_v0  ;;  %1420 = vmatprep.subr.bf16.mxu1 %v1816_v0 }
 0x25b   :  { %1401 = vmatpush3.bf16.msra.mxu0 %v1494_v8  ;;  %1421 = vmatpush3.bf16.msra.mxu1 %v1502_v45  ;;  %v1818_v8 = vmov 0  }
 0x25c   :  { %1402 = vmatprep.subr.bf16.mxu0 %v1816_v0  ;;  %1422 = vmatprep.subr.bf16.mxu1 %v1816_v0 }
 0x25f   :  { %1403 = vmatpush3.bf16.msra.mxu0 %v1495_v9  ;;  %1423 = vmatpush3.bf16.msra.mxu1 %v1503_v46  ;;  %v1236_v9 = vld [vmem:[%s2055_s13] ss:$0 sm:$0xff] }
 0x260   :  { %1404 = vmatprep.subr.bf16.mxu0 %v1816_v0  ;;  %1424 = vmatprep.subr.bf16.mxu1 %v1816_v0 }
 0x263   :  { %1405 = vmatpush3.bf16.msra.mxu0 %v1496_v10  ;;  %1425 = vmatpush3.bf16.msra.mxu1 %v1504_v47 }
 0x264   :  { %1066 = vmatprep.subr.bf16.mxu0 %v1507_v49 }
 0x305   :  { %v591_v16 = vpop.f32.mrf.mxu0  ;;  %v702_v17 = vpop.f32.mrf.mxu1 }
 0x306   :  { %v592_v18 = vadd.f32 %v1209_v14, %v591_v16  ;;  %v703_v19 = vadd.f32 %v1218_v15, %v702_v17 }
 0x307   :  { %v1368_v20 = vpop.f32.mrf.mxu0  ;;  %v1388_v21 = vpop.f32.mrf.mxu1 }
 0x308   :  { %1133 = vst [vmem:[#allocation18] sm:$0x3] %v592_v18  ;;  %v709_v22 = vmin.f32 %v703_v19, 20.0  ;;  %vm708_vm3 = vcmp.gt.f32.partialorder %v703_v19, 20.0 }
 0x309   :  { %v594_v23 = vpop.f32.mrf.mxu0  ;;  %v705_v24 = vpop.f32.mrf.mxu1 }
 0x30a   :  { %v710_v25 = vmul.f32 1.442695, %v709_v22 }
 0x30b   :  { %v1369_v26 = vpop.f32.mrf.mxu0  ;;  %v1389_v27 = vpop.f32.mrf.mxu1 }
 0x30c   :  { %1533 = vpow2.f32 %v710_v25 }
 0x319   :  { %v1534_v28 = vpop.eup %1533 }
 0x31a   :  { %v712_v29 = vadd.f32 1.0, %v1534_v28  ;;  %v715_v30 = vmul.f32 -0.5, %v1534_v28  ;;  %v718_v32 = vand.u32 2147483647, %v1534_v28 }
 0x31c   :  { %1535 = vlog2.f32 %v712_v29  ;;  %v716_v31 = vadd.f32 1.0, %v715_v30  ;;  %vm719_vm2 = vcmp.lt.f32.partialorder %v718_v32, 0.0004427343 }
 0x31e   :  { %v717_v35 = vmul.f32 %v1534_v28, %v716_v31 }
 0x329   :  { %v1536_v33 = vpop.eup %1535 }
 0x32a   :  { %v714_v34 = vmul.f32 0.6931472, %v1536_v33 }
 0x32c   :  { %v720_v36 = vsel %vm719_vm2, %v717_v35, %v714_v34 }
 0x32d   :  { %v721_v37 = vsel %vm708_vm3, %v703_v19, %v720_v36 }
 0x32e   :  { %v722_v39 = vadd.f32 1e-06, %v721_v37 }
 0x330   :  { %v724_v40 = vmul.f32 %v723_v38, %v722_v39  ;;  %1134 = vst [vmem:[#allocation20] sm:$0x3] %v722_v39 }
 0x332   :  { %v725_v41 = vadd.f32 %v724_v40, %v592_v18 }
 0x334   :  { %v726_v42 = vpack.c.bf16 %v725_v41, %v725_v41 }
 0x336   :  { %1407 = vmatmul.mubr.bf16.vlgmr.msra.gmra.mxu0 %v726_v42 }
 0x337   :  { %1067 = vmatpush1.bf16.msra.mxu0 %v1505_v48  ;;  %1098 = vmatprep.mubr.bf16.mxu0 %v1818_v8 }
 0x338   :  { %1068 = vmatprep.subr.bf16.mxu0 %v1510_v50 }
 0x33b   :  { %1069 = vmatpush1.bf16.msra.mxu0 %v1508_v51 }
 0x33c   :  { %1070 = vmatprep.subr.bf16.mxu0 %v1513_v59 }
 0x33f   :  { %1071 = vmatpush1.bf16.msra.mxu0 %v1511_v60 }
 0x340   :  { %1072 = vmatprep.subr.bf16.mxu0 %v1516_v61 }
 0x343   :  { %1073 = vmatpush1.bf16.msra.mxu0 %v1514_v62 }
 0x344   :  { %1074 = vmatprep.subr.bf16.mxu0 %v1519_v63 }
 0x347   :  { %1075 = vmatpush1.bf16.msra.mxu0 %v1517_v1 }
 0x348   :  { %1076 = vmatprep.subr.bf16.mxu0 %v1522_v2 }
 0x34b   :  { %1077 = vmatpush1.bf16.msra.mxu0 %v1520_v3 }
 0x34c   :  { %1078 = vmatprep.subr.bf16.mxu0 %v1525_v4 }
 0x34f   :  { %1079 = vmatpush1.bf16.msra.mxu0 %v1523_v5 }
 0x350   :  { %1080 = vmatprep.subr.bf16.mxu0 %v1528_v6 }
 0x353   :  { %1081 = vmatpush1.bf16.msra.mxu0 %v1526_v7 }
 0x3f6   :  { %v832_v53 = vpop.f32.mrf.mxu0 }
 0x3f7   :  { %v833_v54 = vadd.f32 %v1227_v52, %v832_v53 }
 0x3f8   :  { %v1408_v55 = vpop.f32.mrf.mxu0 }
 0x3f9   :  { %1537 = vtanh.f32 %v833_v54 }
 0x3fa   :  { %v835_v56 = vpop.f32.mrf.mxu0 }
 0x3fc   :  { %v1409_v0 = vpop.f32.mrf.mxu0 }
 0x406   :  { %v1538_v57 = vpop.eup %1537 }
 0x407   :  { %v839_v58 = vpack.c.bf16 %v1538_v57, %v1538_v57 }
 0x409   :  { %1427 = vmatmul.mubr.bf16.vlgmr.msra.gmra.mxu1 %v839_v58 }
 0x4c9   :  { %v945_v10 = vpop.f32.mrf.mxu1 }
 0x4ca   :  { %v946_v11 = vadd.f32 %v1236_v9, %v945_v10 }
 0x4cb   :  { %v1428_v12 = vpop.f32.mrf.mxu1 }
 0x4cc   :  { %v952_v13 = vmin.f32 %v946_v11, 0.0  ;;  %vm951_vm4 = vcmp.gt.f32.partialorder %v946_v11, 0.0 }
 0x4cd   :  { %v948_v14 = vpop.f32.mrf.mxu1 }
 0x4ce   :  { %v953_v15 = vmul.f32 1.442695, %v952_v13 }
 0x4cf   :  { %v1429_v16 = vpop.f32.mrf.mxu1 }
 0x4d0   :  { %1539 = vpow2.f32 %v953_v15 }
 0x4dd   :  { %v1540_v17 = vpop.eup %1539 }
 0x4de   :  { %v1245_v18 = vadd.f32 -1.0, %v1540_v17 }
 0x4e0   :  { %v956_v19 = vsel %vm951_vm4, %v946_v11, %v1245_v18 }
 0x4e1   :  { %v957_v20 = vpack.c.bf16 %v956_v19, %v956_v19 }
 0x4e3   :  { %1099 = vmatmul.mubr.bf16.vlgmr.msra.gmra.mxu0 %v957_v20 }
 0x4e4   :  { %1740 = shalt.err (!%p1737_p7)
}
 0x4e5   :  { %1154 = dma.vmem_to_hbm [thread:$0]  %s1152_s20, 32, %s2059_s17, [#allocation19]  }
 0x4e6   :  { %s1820_s22 = smov [#allocation20]  }
 0x4e7   :  { %s1161_s2 = sshll.u32 %s1820_s22, 4  ;;  %s1162_s2 = int_to_ptr.vmem [resolvable:$true] %s1161_s2 }
 0x4e8   :  { %s1749_s25 = scalar_lea.vmem %s1162_s2, 32  ;;  %p1754_p9 = scmp.lt.s32.totalorder %s1162_s2, %s1162_s2 }
 0x4e9   :  { %p1750_p8 = scmp.ne.s32.totalorder %s1162_s2, %s1749_s25  ;;  %p1755_p10 = scmp.lt.s32.totalorder %s1749_s25, %s1749_s25 }
 0x4eb   :  { %p1756_p11 = por %p1755_p10, %p1754_p9 }
 0x4ed   :  { %p1757_p12 = pnand %p1756_p11, %p1750_p8 }
 0x4ef   :  { %1760 = shalt.err (!%p1757_p12)
}
 0x4f0   :  { %1164 = dma.vmem_to_hbm [thread:$0]  %s1162_s2, 32, %s2060_s18, [#allocation19]   ;;  %v976_v21 = vlaneseq  ;;  %v974_v24 = vld [vmem:[%s2057_s15] sm:$0x3] }
 0x4f1   :  { %s1821_s15 = smov [#allocation17]  }
 0x4f2   :  { %v977_v22 = vshrl.u32 %v976_v21, 7  ;;  %s1141_s17 = sshll.u32 %s1821_s15, 4  ;;  %s1142_s17 = int_to_ptr.vmem [resolvable:$true] %s1141_s17 }
 0x4f3   :  { %s1769_s18 = scalar_lea.vmem %s1142_s17, 64  ;;  %p1774_p0 = scmp.lt.s32.totalorder %s1142_s17, %s1142_s17 }
 0x4f4   :  { %v978_v23 = vsub.s32 0, %v977_v22  ;;  %v982_v25 = vsub.s32 1, %v977_v22  ;;  %p1770_p13 = scmp.ne.s32.totalorder %s1142_s17, %s1769_s18  ;;  %p1775_p1 = scmp.lt.s32.totalorder %s1769_s18, %s1769_s18 }
 0x4f6   :  { %v979_v26 = vrot.slane %v974_v24, %v978_v23  ;;  %v983_v27 = vrot.slane %v974_v24, %v982_v25  ;;  %p1776_p2 = por %p1775_p1, %p1774_p0 }
 0x4f8   :  { %p1777_p3 = pnand %p1776_p2, %p1770_p13 }
 0x5a3   :  { %v1100_v28 = vpop.f32.mrf.mxu0 }
 0x5a4   :  { %v1101_v29 = vadd.f32 %v1100_v28, %v979_v26 }
 0x5a5   :  { %v1102_v30 = vpop.f32.mrf.mxu0 }
 0x5a6   :  { %v1107_v31 = vsub.f32 0.0, %v1101_v29  ;;  %v1103_v32 = vadd.f32 %v1102_v30, %v983_v27 }
 0x5a7   :  { %v1104_v33 = vpop.f32.mrf.mxu0 }
 0x5a8   :  { %v1109_v34 = vmul.f32 1.442695, %v1107_v31  ;;  %v1108_v35 = vsub.f32 0.0, %v1103_v32 }
 0x5a9   :  { %v1105_v36 = vpop.f32.mrf.mxu0 }
 0x5aa   :  { %1541 = vpow2.f32 %v1109_v34  ;;  %v1111_v37 = vmul.f32 1.442695, %v1108_v35 }
 0x5ac   :  { %1543 = vpow2.f32 %v1111_v37 }
 0x5b7   :  { %v1542_v38 = vpop.eup %1541 }
 0x5b8   :  { %v1113_v39 = vadd.f32 1.0, %v1542_v38 }
 0x5b9   :  { %v1544_v40 = vpop.eup %1543 }
 0x5ba   :  { %1545 = vrcp.f32 %v1113_v39  ;;  %v1114_v41 = vadd.f32 1.0, %v1544_v40 }
 0x5bc   :  { %1547 = vrcp.f32 %v1114_v41 }
 0x5c7   :  { %v1546_v42 = vpop.eup %1545 }
 0x5c8   :  { %v1117_v43 = vmax.f32 %v1546_v42, 1e-08 }
 0x5c9   :  { %v1548_v44 = vpop.eup %1547 }
 0x5ca   :  { %v1118_v45 = vmax.f32 %v1548_v44, 1e-08  ;;  %v1119_v46 = vmin.f32 %v1117_v43, 1.0 }
 0x5cc   :  { %v1120_v47 = vmin.f32 %v1118_v45, 1.0 }
 0x5ce   :  { %v1123_v48 = vcombine.low %v1119_v46, %v1120_v47 }
 0x5d0   :  { %1262 = vst.sshfl [vmem:[#allocation17] sm:$0x33 pattern:$0x76325410] %v1123_v48 }
 0x5d1   :  { %1780 = shalt.err (!%p1777_p3)
}
 0x5d2   :  { %1144 = dma.vmem_to_hbm [thread:$0]  %s1142_s17, 64, %s2058_s16, [#allocation4]  }
 0x5d3   :  { %1799 = dma.done.wait [#allocation4], 64  }
 0x5d4   :  { %1800 = vsyncadd [#allocation4], 4294967232 }
 0x5d5   :  { %1801 = dma.done.wait [#allocation19], 64  }
 0x5d6   :  { %1802 = vsyncadd [#allocation19], 4294967232 }
 0x5d7   :  { %1174 = vsyncpa [#allocation3], 1 }
 0x5d8   :  { %1175 = vsyncpa [#allocation6], 1 }
 0x5d9   :  { %1176 = vsyncpa [#allocation9], 1 }
 0x5da   :  { %1177 = vsyncpa [#allocation12], 1 }
 0x5db   :  { %1178 = vsyncpa [#allocation15], 1 }
 0x5dc   :  { %1179 = vsyncpa [#allocation4], 1 }
 0x5dd   :  { %1180 = vsyncpa [#allocation19], 1 }

</bundles_post_ra>
